<compile_context>
chip_gen: v5e
topology: v5e:2x2
jax: 0.10.0
libtpu: 0.0.40
codegen_flags: <defaults>
</compile_context>

<pallas_src>
import functools

import jax
import jax.numpy as jnp
from jax import lax
from jax.experimental import pallas as pl
from jax.experimental.pallas import tpu as pltpu

LEAKY_SLOPE = 0.01   # torch.nn.LeakyReLU default
LN_EPS = 1e-5        # torch.nn.LayerNorm default


def _round_up(x, m):
    return (x + m - 1) // m * m


def _make_mlp_kernel(n_layers, has_head, compute_dtype):
    """Builds a fused kernel: ((Linear -> LeakyReLU -> LayerNorm) x n_layers) [-> Linear(1)]."""

    def kernel(*refs):
        x_ref, o_ref = refs[0], refs[-1]
        p = refs[1:-1]

        h = x_ref[...]
        for l in range(n_layers):
            w_ref, b_ref, g_ref, be_ref = p[4 * l: 4 * l + 4]
            # MXU matmul (bf16 or f32 operands), f32 accumulation.
            h = jnp.dot(h.astype(compute_dtype), w_ref[...],
                        preferred_element_type=jnp.float32)
            h = h + b_ref[...]                               # (TM, D) + (1, D)
            h = jnp.where(h >= 0, h, LEAKY_SLOPE * h)        # LeakyReLU (VPU)
            mu = jnp.mean(h, axis=-1, keepdims=True)         # LayerNorm (XLU reduce)
            var = jnp.mean((h - mu) * (h - mu), axis=-1, keepdims=True)
            h = (h - mu) * lax.rsqrt(var + LN_EPS)           # rsqrt -> EUP slot (free-ish)
            h = h * g_ref[...] + be_ref[...]
            # TODO(synk): Dropout is identity at inference; training-mode RNG masking not emitted.

        if has_head:
            wo_ref, bo_ref = p[4 * n_layers], p[4 * n_layers + 1]
            # 1-unit head: VPU multiply + lane reduce (no N=1 MXU matmul).
            y = jnp.sum(h * wo_ref[...], axis=-1, keepdims=True) + bo_ref[...]
            o_ref[...] = y.astype(o_ref.dtype)
        else:
            o_ref[...] = h.astype(o_ref.dtype)

    return kernel


@functools.partial(jax.jit, static_argnames=("compute_dtype", "block_rows"))
def fused_mlp_forward(x, layer_params, out_params, *,
                      compute_dtype=jnp.float32, block_rows=256):
    """Run the whole MLP as one Pallas kernel.

    x: (B, input_dim) float32
    layer_params: list of dicts {w:(d_in,d_out), b:(d_out,), gamma:(d_out,), beta:(d_out,)}
    out_params: dict {w:(d_last, 1), b:(1,)} or None
    """
    B, D_in = x.shape
    n_layers = len(layer_params)
    has_head = out_params is not None

    # Batch row tile: multiple of 8 sublanes; capped by block_rows (multiple of 128
    # recommended at scale). v7x note: its VMEM is half of v5e/v6e — block_rows=256
    # keeps the double-buffered x tile tiny here; lower it if feature dims grow large.
    tm = min(block_rows, _round_up(max(B, 1), 8))
    B_pad = _round_up(B, tm)
    x_p = x if B_pad == B else jnp.pad(x, ((0, B_pad - B), (0, 0)))
    x_p = x_p.astype(compute_dtype)

    const2 = lambda i: (0, 0)   # grid-invariant blocks: weights stay resident in VMEM

    inputs = [x_p]
    in_specs = [pl.BlockSpec((tm, D_in), lambda i: (i, 0))]

    d_last = D_in
    for p in layer_params:
        d_in_l, d_out = p["w"].shape
        w = p["w"].astype(compute_dtype)     # bf16 weights halve weight DMA bytes on v6e/v7x
        inputs += [w,
                   p["b"].reshape(1, d_out).astype(jnp.float32),
                   p["gamma"].reshape(1, d_out).astype(jnp.float32),
                   p["beta"].reshape(1, d_out).astype(jnp.float32)]
        in_specs += [pl.BlockSpec((d_in_l, d_out), const2),
                     pl.BlockSpec((1, d_out), const2),
                     pl.BlockSpec((1, d_out), const2),
                     pl.BlockSpec((1, d_out), const2)]
        d_last = d_out

    if has_head:
        inputs += [out_params["w"].reshape(1, d_last).astype(jnp.float32),
                   out_params["b"].reshape(1, 1).astype(jnp.float32)]
        in_specs += [pl.BlockSpec((1, d_last), const2),
                     pl.BlockSpec((1, 1), const2)]
        d_final = 1
    else:
        d_final = d_last

    kernel = _make_mlp_kernel(n_layers, has_head, compute_dtype)

    y = pl.pallas_call(
        kernel,
        out_shape=jax.ShapeDtypeStruct((B_pad, d_final), jnp.float32),
        grid=(B_pad // tm,),
        in_specs=in_specs,
        out_specs=pl.BlockSpec((tm, d_final), lambda i: (i, 0)),
        compiler_params=pltpu.CompilerParams(
            dimension_semantics=("parallel",)),      # megacore sharding on v7x
    )(*inputs)

    return y[:B]


def init_mlp_params(key, input_dim, embed_dims, output_layer_flag=True):
    """Deterministic init mirroring torch.nn.Linear (uniform ±1/sqrt(fan_in)) and LayerNorm (1, 0)."""
    params = []
    d_in = input_dim
    for d_out in embed_dims:
        key, kw, kb = jax.random.split(key, 3)
        bound = 1.0 / (d_in ** 0.5)
        w = jax.random.uniform(kw, (d_in, d_out), jnp.float32, -bound, bound)
        b = jax.random.uniform(kb, (d_out,), jnp.float32, -bound, bound)
        gamma = jnp.ones((d_out,), jnp.float32)
        beta = jnp.zeros((d_out,), jnp.float32)
        params.append(dict(w=w, b=b, gamma=gamma, beta=beta))
        d_in = d_out
    out_params = None
    if output_layer_flag:
        key, kw, kb = jax.random.split(key, 3)
        bound = 1.0 / (d_in ** 0.5)
        w = jax.random.uniform(kw, (d_in, 1), jnp.float32, -bound, bound)
        b = jax.random.uniform(kb, (1,), jnp.float32, -bound, bound)
        out_params = dict(w=w, b=b)
    return params, out_params


def _reference_forward(x, layer_params, out_params):
    """Pure-JAX f32 reference for sanity checking."""
    h = x
    for p in layer_params:
        h = h @ p["w"] + p["b"]
        h = jnp.where(h >= 0, h, LEAKY_SLOPE * h)
        mu = jnp.mean(h, axis=-1, keepdims=True)
        var = jnp.mean((h - mu) ** 2, axis=-1, keepdims=True)
        h = (h - mu) / jnp.sqrt(var + LN_EPS) * p["gamma"] + p["beta"]
    if out_params is not None:
        h = h @ out_params["w"] + out_params["b"]
    return h


if __name__ == "__main__":
    key = jax.random.PRNGKey(0)
    input_dim = 32
    embed_dims = (64, 32)
    dropout = 0.2  # identity at inference

    k_x, k_p, k_x2 = jax.random.split(key, 3)
    layer_params, out_params = init_mlp_params(k_p, input_dim, embed_dims, True)

    # 1) Small batch (single grid step), f32 compute — tight correctness check.
    x = jax.random.normal(k_x, (8, input_dim), dtype=jnp.float32)
    y = jax.block_until_ready(fused_mlp_forward(x, layer_params, out_params))
    y_ref = _reference_forward(x, layer_params, out_params)
    assert y.shape == (8, 1), y.shape
    assert jnp.allclose(y, y_ref, atol=2e-4, rtol=2e-4), "mismatch vs reference (f32, small batch)"

    # 2) Larger batch exercising the batch grid + padding (grid of 3 tiles of 128 rows).
    x2 = jax.random.normal(k_x2, (300, input_dim), dtype=jnp.float32)
    y2 = jax.block_until_ready(
        fused_mlp_forward(x2, layer_params, out_params, block_rows=128))
    y2_ref = _reference_forward(x2, layer_params, out_params)
    assert y2.shape == (300, 1), y2.shape
    assert jnp.allclose(y2, y2_ref, atol=2e-4, rtol=2e-4), "mismatch vs reference (f32, gridded)"

    # 3) bf16 MXU fast path (v6e/v7x), f32 accumulation + f32 LN epilogue — loose check.
    y3 = jax.block_until_ready(
        fused_mlp_forward(x2, layer_params, out_params,
                          compute_dtype=jnp.bfloat16, block_rows=128))
    assert y3.shape == (300, 1), y3.shape
    assert jnp.allclose(y3, y2_ref, atol=1e-1, rtol=1e-1), "mismatch vs reference (bf16)"

    print("KERNEL_OK")
</pallas_src>

<mosaic_0001>
module attributes {stable_mosaic.version = 11 : i64} {
  func.func @kernel(%arg0: i32, %arg1: memref<8x32xf32, #tpu.memory_space<vmem>>, %arg2: memref<32x64xf32, #tpu.memory_space<vmem>>, %arg3: memref<1x64xf32, #tpu.memory_space<vmem>>, %arg4: memref<1x64xf32, #tpu.memory_space<vmem>>, %arg5: memref<1x64xf32, #tpu.memory_space<vmem>>, %arg6: memref<64x32xf32, #tpu.memory_space<vmem>>, %arg7: memref<1x32xf32, #tpu.memory_space<vmem>>, %arg8: memref<1x32xf32, #tpu.memory_space<vmem>>, %arg9: memref<1x32xf32, #tpu.memory_space<vmem>>, %arg10: memref<1x32xf32, #tpu.memory_space<vmem>>, %arg11: memref<1x1xf32, #tpu.memory_space<vmem>>, %arg12: memref<8x1xf32, #tpu.memory_space<vmem>>) attributes {dimension_semantics = [#tpu.dimension_semantics<parallel>], iteration_bounds = array<i64: 1>, scalar_prefetch = 0 : i64, scratch_operands = 0 : i64, tpu.core_type = #tpu.core_type<tc>, window_params = [{transform_indices = @transform_0, window_bounds = array<i64: 8, 32>}, {pipeline_mode = #tpu.pipeline_mode<synchronous>, transform_indices = @transform_1, window_bounds = array<i64: 32, 64>}, {pipeline_mode = #tpu.pipeline_mode<synchronous>, transform_indices = @transform_2, window_bounds = array<i64: 1, 64>}, {pipeline_mode = #tpu.pipeline_mode<synchronous>, transform_indices = @transform_3, window_bounds = array<i64: 1, 64>}, {pipeline_mode = #tpu.pipeline_mode<synchronous>, transform_indices = @transform_4, window_bounds = array<i64: 1, 64>}, {pipeline_mode = #tpu.pipeline_mode<synchronous>, transform_indices = @transform_5, window_bounds = array<i64: 64, 32>}, {pipeline_mode = #tpu.pipeline_mode<synchronous>, transform_indices = @transform_6, window_bounds = array<i64: 1, 32>}, {pipeline_mode = #tpu.pipeline_mode<synchronous>, transform_indices = @transform_7, window_bounds = array<i64: 1, 32>}, {pipeline_mode = #tpu.pipeline_mode<synchronous>, transform_indices = @transform_8, window_bounds = array<i64: 1, 32>}, {pipeline_mode = #tpu.pipeline_mode<synchronous>, transform_indices = @transform_9, window_bounds = array<i64: 1, 32>}, {pipeline_mode = #tpu.pipeline_mode<synchronous>, transform_indices = @transform_10, window_bounds = array<i64: 1, 1>}, {transform_indices = @transform_11, window_bounds = array<i64: 8, 1>}]} {
    %c0 = arith.constant 0 : index
    %c0_0 = arith.constant 0 : index
    %0 = vector.load %arg1[%c0, %c0_0] : memref<8x32xf32, #tpu.memory_space<vmem>>, vector<8x32xf32>
    %c0_1 = arith.constant 0 : index
    %c0_2 = arith.constant 0 : index
    %1 = vector.load %arg2[%c0_1, %c0_2] : memref<32x64xf32, #tpu.memory_space<vmem>>, vector<32x64xf32>
    %cst = arith.constant dense<0.000000e+00> : vector<8x64xf32>
    %2 = tpu.matmul %0, %1, %cst {dimension_numbers = #tpu.dot_dimension_numbers<[1], [0], [0], [1], [0, 0, 1, 1], [], []>} : vector<8x32xf32>, vector<32x64xf32>, vector<8x64xf32> -> vector<8x64xf32>
    %c0_3 = arith.constant 0 : index
    %c0_4 = arith.constant 0 : index
    %3 = vector.load %arg3[%c0_3, %c0_4] : memref<1x64xf32, #tpu.memory_space<vmem>>, vector<1x64xf32>
    %4 = vector.broadcast %3 : vector<1x64xf32> to vector<8x64xf32>
    %5 = arith.addf %2, %4 : vector<8x64xf32>
    %cst_5 = arith.constant 0.000000e+00 : f32
    %6 = vector.broadcast %cst_5 : f32 to vector<8x64xf32>
    %7 = arith.cmpf oge, %5, %6 : vector<8x64xf32>
    %cst_6 = arith.constant 0.00999999977 : f32
    %8 = vector.broadcast %cst_6 : f32 to vector<8x64xf32>
    %9 = arith.mulf %8, %5 : vector<8x64xf32>
    %10 = arith.select %7, %5, %9 : vector<8x64xi1>, vector<8x64xf32>
    %cst_7 = arith.constant dense<0.000000e+00> : vector<8xf32>
    %11 = vector.multi_reduction <add>, %10, %cst_7 [1] : vector<8x64xf32> to vector<8xf32>
    %12 = vector.shape_cast %11 : vector<8xf32> to vector<8x1xf32>
    %cst_8 = arith.constant 6.400000e+01 : f32
    %13 = vector.broadcast %cst_8 : f32 to vector<8x1xf32>
    %14 = arith.divf %12, %13 : vector<8x1xf32>
    %15 = vector.broadcast %14 : vector<8x1xf32> to vector<8x64xf32>
    %16 = arith.subf %10, %15 : vector<8x64xf32>
    %17 = vector.broadcast %14 : vector<8x1xf32> to vector<8x64xf32>
    %18 = arith.subf %10, %17 : vector<8x64xf32>
    %19 = arith.mulf %16, %18 : vector<8x64xf32>
    %cst_9 = arith.constant dense<0.000000e+00> : vector<8xf32>
    %20 = vector.multi_reduction <add>, %19, %cst_9 [1] : vector<8x64xf32> to vector<8xf32>
    %21 = vector.shape_cast %20 : vector<8xf32> to vector<8x1xf32>
    %cst_10 = arith.constant 6.400000e+01 : f32
    %22 = vector.broadcast %cst_10 : f32 to vector<8x1xf32>
    %23 = arith.divf %21, %22 : vector<8x1xf32>
    %24 = vector.broadcast %14 : vector<8x1xf32> to vector<8x64xf32>
    %25 = arith.subf %10, %24 : vector<8x64xf32>
    %cst_11 = arith.constant 9.99999974E-6 : f32
    %26 = vector.broadcast %cst_11 : f32 to vector<8x1xf32>
    %27 = arith.addf %23, %26 : vector<8x1xf32>
    %28 = math.rsqrt %27 : vector<8x1xf32>
    %29 = vector.broadcast %28 : vector<8x1xf32> to vector<8x64xf32>
    %30 = arith.mulf %25, %29 : vector<8x64xf32>
    %c0_12 = arith.constant 0 : index
    %c0_13 = arith.constant 0 : index
    %31 = vector.load %arg4[%c0_12, %c0_13] : memref<1x64xf32, #tpu.memory_space<vmem>>, vector<1x64xf32>
    %32 = vector.broadcast %31 : vector<1x64xf32> to vector<8x64xf32>
    %33 = arith.mulf %30, %32 : vector<8x64xf32>
    %c0_14 = arith.constant 0 : index
    %c0_15 = arith.constant 0 : index
    %34 = vector.load %arg5[%c0_14, %c0_15] : memref<1x64xf32, #tpu.memory_space<vmem>>, vector<1x64xf32>
    %35 = vector.broadcast %34 : vector<1x64xf32> to vector<8x64xf32>
    %36 = arith.addf %33, %35 : vector<8x64xf32>
    %c0_16 = arith.constant 0 : index
    %c0_17 = arith.constant 0 : index
    %37 = vector.load %arg6[%c0_16, %c0_17] : memref<64x32xf32, #tpu.memory_space<vmem>>, vector<64x32xf32>
    %cst_18 = arith.constant dense<0.000000e+00> : vector<8x32xf32>
    %38 = tpu.matmul %36, %37, %cst_18 {dimension_numbers = #tpu.dot_dimension_numbers<[1], [0], [0], [1], [0, 0, 1, 1], [], []>} : vector<8x64xf32>, vector<64x32xf32>, vector<8x32xf32> -> vector<8x32xf32>
    %c0_19 = arith.constant 0 : index
    %c0_20 = arith.constant 0 : index
    %39 = vector.load %arg7[%c0_19, %c0_20] : memref<1x32xf32, #tpu.memory_space<vmem>>, vector<1x32xf32>
    %40 = vector.broadcast %39 : vector<1x32xf32> to vector<8x32xf32>
    %41 = arith.addf %38, %40 : vector<8x32xf32>
    %cst_21 = arith.constant 0.000000e+00 : f32
    %42 = vector.broadcast %cst_21 : f32 to vector<8x32xf32>
    %43 = arith.cmpf oge, %41, %42 : vector<8x32xf32>
    %cst_22 = arith.constant 0.00999999977 : f32
    %44 = vector.broadcast %cst_22 : f32 to vector<8x32xf32>
    %45 = arith.mulf %44, %41 : vector<8x32xf32>
    %46 = arith.select %43, %41, %45 : vector<8x32xi1>, vector<8x32xf32>
    %cst_23 = arith.constant dense<0.000000e+00> : vector<8xf32>
    %47 = vector.multi_reduction <add>, %46, %cst_23 [1] : vector<8x32xf32> to vector<8xf32>
    %48 = vector.shape_cast %47 : vector<8xf32> to vector<8x1xf32>
    %cst_24 = arith.constant 3.200000e+01 : f32
    %49 = vector.broadcast %cst_24 : f32 to vector<8x1xf32>
    %50 = arith.divf %48, %49 : vector<8x1xf32>
    %51 = vector.broadcast %50 : vector<8x1xf32> to vector<8x32xf32>
    %52 = arith.subf %46, %51 : vector<8x32xf32>
    %53 = vector.broadcast %50 : vector<8x1xf32> to vector<8x32xf32>
    %54 = arith.subf %46, %53 : vector<8x32xf32>
    %55 = arith.mulf %52, %54 : vector<8x32xf32>
    %cst_25 = arith.constant dense<0.000000e+00> : vector<8xf32>
    %56 = vector.multi_reduction <add>, %55, %cst_25 [1] : vector<8x32xf32> to vector<8xf32>
    %57 = vector.shape_cast %56 : vector<8xf32> to vector<8x1xf32>
    %cst_26 = arith.constant 3.200000e+01 : f32
    %58 = vector.broadcast %cst_26 : f32 to vector<8x1xf32>
    %59 = arith.divf %57, %58 : vector<8x1xf32>
    %60 = vector.broadcast %50 : vector<8x1xf32> to vector<8x32xf32>
    %61 = arith.subf %46, %60 : vector<8x32xf32>
    %cst_27 = arith.constant 9.99999974E-6 : f32
    %62 = vector.broadcast %cst_27 : f32 to vector<8x1xf32>
    %63 = arith.addf %59, %62 : vector<8x1xf32>
    %64 = math.rsqrt %63 : vector<8x1xf32>
    %65 = vector.broadcast %64 : vector<8x1xf32> to vector<8x32xf32>
    %66 = arith.mulf %61, %65 : vector<8x32xf32>
    %c0_28 = arith.constant 0 : index
    %c0_29 = arith.constant 0 : index
    %67 = vector.load %arg8[%c0_28, %c0_29] : memref<1x32xf32, #tpu.memory_space<vmem>>, vector<1x32xf32>
    %68 = vector.broadcast %67 : vector<1x32xf32> to vector<8x32xf32>
    %69 = arith.mulf %66, %68 : vector<8x32xf32>
    %c0_30 = arith.constant 0 : index
    %c0_31 = arith.constant 0 : index
    %70 = vector.load %arg9[%c0_30, %c0_31] : memref<1x32xf32, #tpu.memory_space<vmem>>, vector<1x32xf32>
    %71 = vector.broadcast %70 : vector<1x32xf32> to vector<8x32xf32>
    %72 = arith.addf %69, %71 : vector<8x32xf32>
    %c0_32 = arith.constant 0 : index
    %c0_33 = arith.constant 0 : index
    %73 = vector.load %arg10[%c0_32, %c0_33] : memref<1x32xf32, #tpu.memory_space<vmem>>, vector<1x32xf32>
    %74 = vector.broadcast %73 : vector<1x32xf32> to vector<8x32xf32>
    %75 = arith.mulf %72, %74 : vector<8x32xf32>
    %cst_34 = arith.constant dense<0.000000e+00> : vector<8xf32>
    %76 = vector.multi_reduction <add>, %75, %cst_34 [1] : vector<8x32xf32> to vector<8xf32>
    %77 = vector.shape_cast %76 : vector<8xf32> to vector<8x1xf32>
    %c0_35 = arith.constant 0 : index
    %c0_36 = arith.constant 0 : index
    %78 = vector.load %arg11[%c0_35, %c0_36] : memref<1x1xf32, #tpu.memory_space<vmem>>, vector<1x1xf32>
    %79 = vector.broadcast %78 : vector<1x1xf32> to vector<8x1xf32>
    %80 = arith.addf %77, %79 : vector<8x1xf32>
    %c0_37 = arith.constant 0 : index
    %c0_38 = arith.constant 0 : index
    %81 = vector.load %arg12[%c0_37, %c0_38] : memref<8x1xf32, #tpu.memory_space<vmem>>, vector<8x1xf32>
    tpu.vector_store %arg12[%c0_37, %c0_38], %80 {strides = array<i32>} : memref<8x1xf32, #tpu.memory_space<vmem>>, vector<8x1xf32>,
    return
  }
  func.func @transform_0(%arg0: i32) -> (i32, i32) {
    %c0_i32 = arith.constant 0 : i32
    %c0_i32_0 = arith.constant 0 : i32
    return %arg0, %c0_i32 : i32, i32
  }
  func.func @transform_1(%arg0: i32) -> (i32, i32) {
    %c0_i32 = arith.constant 0 : i32
    %c0_i32_0 = arith.constant 0 : i32
    %c0_i32_1 = arith.constant 0 : i32
    return %c0_i32, %c0_i32_0 : i32, i32
  }
  func.func @transform_2(%arg0: i32) -> (i32, i32) {
    %c0_i32 = arith.constant 0 : i32
    %c0_i32_0 = arith.constant 0 : i32
    %c0_i32_1 = arith.constant 0 : i32
    return %c0_i32, %c0_i32_0 : i32, i32
  }
  func.func @transform_3(%arg0: i32) -> (i32, i32) {
    %c0_i32 = arith.constant 0 : i32
    %c0_i32_0 = arith.constant 0 : i32
    %c0_i32_1 = arith.constant 0 : i32
    return %c0_i32, %c0_i32_0 : i32, i32
  }
  func.func @transform_4(%arg0: i32) -> (i32, i32) {
    %c0_i32 = arith.constant 0 : i32
    %c0_i32_0 = arith.constant 0 : i32
    %c0_i32_1 = arith.constant 0 : i32
    return %c0_i32, %c0_i32_0 : i32, i32
  }
  func.func @transform_5(%arg0: i32) -> (i32, i32) {
    %c0_i32 = arith.constant 0 : i32
    %c0_i32_0 = arith.constant 0 : i32
    %c0_i32_1 = arith.constant 0 : i32
    return %c0_i32, %c0_i32_0 : i32, i32
  }
  func.func @transform_6(%arg0: i32) -> (i32, i32) {
    %c0_i32 = arith.constant 0 : i32
    %c0_i32_0 = arith.constant 0 : i32
    %c0_i32_1 = arith.constant 0 : i32
    return %c0_i32, %c0_i32_0 : i32, i32
  }
  func.func @transform_7(%arg0: i32) -> (i32, i32) {
    %c0_i32 = arith.constant 0 : i32
    %c0_i32_0 = arith.constant 0 : i32
    %c0_i32_1 = arith.constant 0 : i32
    return %c0_i32, %c0_i32_0 : i32, i32
  }
  func.func @transform_8(%arg0: i32) -> (i32, i32) {
    %c0_i32 = arith.constant 0 : i32
    %c0_i32_0 = arith.constant 0 : i32
    %c0_i32_1 = arith.constant 0 : i32
    return %c0_i32, %c0_i32_0 : i32, i32
  }
  func.func @transform_9(%arg0: i32) -> (i32, i32) {
    %c0_i32 = arith.constant 0 : i32
    %c0_i32_0 = arith.constant 0 : i32
    %c0_i32_1 = arith.constant 0 : i32
    return %c0_i32, %c0_i32_0 : i32, i32
  }
  func.func @transform_10(%arg0: i32) -> (i32, i32) {
    %c0_i32 = arith.constant 0 : i32
    %c0_i32_0 = arith.constant 0 : i32
    %c0_i32_1 = arith.constant 0 : i32
    return %c0_i32, %c0_i32_0 : i32, i32
  }
  func.func @transform_11(%arg0: i32) -> (i32, i32) {
    %c0_i32 = arith.constant 0 : i32
    %c0_i32_0 = arith.constant 0 : i32
    return %arg0, %c0_i32 : i32, i32
  }
}

</mosaic_0001>

<bundles_post_ra>
// kernel: fused_mlp_forward.1
= control target key start
LH: loop header
LB: loop body
LE: loop exit
PB: predicated region body
PF: predicated region fallthrough
CT: control target
= control target key end

     0   :  { %vm49_vm0 = vcmask 261120   ;;  %vm76_vm2 = vcmask 523264   ;;  %v232_v11 = vmov 64.0   ;;  %v233_v52 = vmov 32.0   ;;  %s367_s1 = inlined_call_operand.vmem [shape: f32[32,64], index: 1, kind: input, shape index: {}]   ;;  %s368_s2 = inlined_call_operand.vmem [shape: f32[1,64], index: 2, kind: input, shape index: {}]   ;;  %s369_s0 = inlined_call_operand.vmem [shape: f32[8,32], index: 0, kind: input, shape index: {}]   ;;  %s370_s3 = inlined_call_operand.vmem [shape: f32[1,64], index: 3, kind: input, shape index: {}]   ;;  %s371_s4 = inlined_call_operand.vmem [shape: f32[1,64], index: 4, kind: input, shape index: {}]   ;;  %s372_s6 = inlined_call_operand.vmem [shape: f32[1,32], index: 6, kind: input, shape index: {}]   ;;  %s373_s5 = inlined_call_operand.vmem [shape: f32[64,32], index: 5, kind: input, shape index: {}]   ;;  %s374_s7 = inlined_call_operand.vmem [shape: f32[1,32], index: 7, kind: input, shape index: {}]   ;;  %s375_s8 = inlined_call_operand.vmem [shape: f32[1,32], index: 8, kind: input, shape index: {}]   ;;  %s376_s9 = inlined_call_operand.vmem [shape: f32[1,32], index: 9, kind: input, shape index: {}]   ;;  %s377_s10 = inlined_call_operand.<no memory space> [shape: f32[1,1], index: 10, kind: input, shape index: {}]   ;;  %s378_s11 = inlined_call_operand.vmem [shape: f32[8,1], index: 11, kind: output, shape index: {}]  }
   0x1   :  { %v44_v0 = vld [vmem:[%s367_s1 + $0x18] sm:$0xff]  ;;  %v43_v1 = vld [vmem:[%s367_s1 + $0x10] sm:$0xff]  ;;  %v42_v2 = vld [vmem:[%s367_s1 + $0x8] sm:$0xff]  ;;  %224 = vrcp.f32 %v232_v11  ;;  %vm206_vm12 = vcmask 7168  }
   0x2   :  { %65 = vmatpush.msra.mxu0 %v44_v0  ;;  %v41_v3 = vld [vmem:[%s367_s1] sm:$0xff]  ;;  %v123_v23 = vld [vmem:[%s373_s5 + $0x38] sm:$0xff]  ;;  %v122_v24 = vld [vmem:[%s373_s5 + $0x30] sm:$0xff] }
   0x3   :  { %v40_v4 = vld [vmem:[%s369_s0] sm:$0xff]  ;;  %139 = vmatpush.msra.mxu1 %v123_v23  ;;  %v121_v25 = vld [vmem:[%s373_s5 + $0x28] sm:$0xff]  ;;  %v119_v27 = vld [vmem:[%s373_s5 + $0x18] sm:$0xff] }
   0x4   :  { %66 = vmatpush.msra.mxu0 %v43_v1  ;;  %v216_v5 = vld [vmem:[%s368_s2] ss:$0 sm:$0xff]  ;;  %v118_v28 = vld [vmem:[%s373_s5 + $0x10] sm:$0xff]  ;;  %v117_v29 = vld [vmem:[%s373_s5 + $0x8] sm:$0xff]  ;;  %v16_v1 = vstv %s377_s10 }
   0x5   :  { %140 = vmatpush.msra.mxu1 %v122_v24  ;;  %v120_v26 = vld [vmem:[%s373_s5 + $0x20] sm:$0xff]  ;;  %17 = vst [vmem:[#allocation2] sm:$0x1] %v16_v1 }
   0x6   :  { %67 = vmatpush.msra.mxu0 %v42_v2  ;;  %v116_v30 = vld [vmem:[%s373_s5] sm:$0xff] }
   0x7   :  { %v225_v12 = vpop.eup %224  ;;  %141 = vmatpush.msra.mxu1 %v121_v25  ;;  %v217_v40 = vld [vmem:[%s370_s3] ss:$0 sm:$0xff] }
   0x8   :  { %68 = vmatpush.msra.mxu0 %v41_v3  ;;  %v81_v13 = vmul.f32 64.0, %v225_v12  ;;  %vm85_vm3 = vweird.f32 %v225_v12  ;;  %v218_v43 = vld [vmem:[%s371_s4] ss:$0 sm:$0xff] }
   0x9   :  { %212 = vmatmul.msk.f32.vlgmr.msra.gmra.mxu0 %vm49_vm0, %v40_v4  ;;  %142 = vmatpush.msra.mxu1 %v120_v26  ;;  %v219_v46 = vld [vmem:[%s372_s6] ss:$0 sm:$0xff] }
   0xa   :  { %v82_v14 = vsub.f32 1.0, %v81_v13  ;;  %v221_v13 = vld [vmem:[%s375_s8] ss:$0 sm:$0xff] }
   0xb   :  { %143 = vmatpush.msra.mxu1 %v119_v27 }
   0xc   :  { %v83_v15 = vmul.f32 %v225_v12, %v82_v14 }
   0xd   :  { %144 = vmatpush.msra.mxu1 %v118_v28 }
   0xe   :  { %v84_v16 = vadd.f32 %v225_v12, %v83_v15  ;;  %v222_v15 = vld [vmem:[%s376_s9] ss:$0 sm:$0xff] }
   0xf   :  { %145 = vmatpush.msra.mxu1 %v117_v29 }
  0x10   :  { %v86_v17 = vsel %vm85_vm3, %v225_v12, %v84_v16 }
  0x11   :  { %146 = vmatpush.msra.mxu1 %v116_v30 }
  0x86   :  { %v70_v6 = vpop.f32.mrf.mxu0 }
  0x87   :  { %v71_v7 = vadd.f32 %v216_v5, %v70_v6 }
  0x89   :  { %v74_v8 = vmul.f32 0.01, %v71_v7  ;;  %vm73_vm1 = vcmp.ge.f32.partialorder %v71_v7, 0.0 }
  0x8b   :  { %v75_v9 = vsel %vm73_vm1, %v71_v7, %v74_v8 }
  0x8c   :  { %v77_v10 = vsel %vm76_vm2, %v75_v9, 0.0 }
  0x8d   :  { %78 = vadd.xlane.f32.xlu0 %v77_v10  ;;  %v220_v10 = vld [vmem:[%s374_s7] ss:$0 sm:$0xff] }
 0x100   :  { %v79_v18 = vpop.xlane.xlu0 %78 }
 0x101   :  { %v87_v19 = vmul.f32 %v86_v17, %v79_v18 }
 0x103   :  { %v88_v20 = vsub.f32 %v75_v9, %v87_v19  ;;  %v223_v19 = vld [vmem:[#allocation2] ss:$0 sm:$0xff] }
 0x105   :  { %v89_v21 = vmul.f32 %v88_v20, %v88_v20 }
 0x107   :  { %v90_v22 = vsel %vm76_vm2, %v89_v21, 0.0 }
 0x108   :  { %91 = vadd.xlane.f32.xlu0 %v90_v22 }
 0x17b   :  { %v92_v31 = vpop.xlane.xlu0 %91 }
 0x17c   :  { %v93_v32 = vmul.f32 %v92_v31, %v86_v17 }
 0x17e   :  { %v94_v33 = vadd.f32 1e-05, %v93_v32 }
 0x180   :  { %226 = vrsqrt.f32 %v94_v33  ;;  %vm101_vm5 = vweird.f32 %v94_v33 }
 0x181   :  { %228 = vrcp.f32 %v233_v52 }
 0x186   :  { %v227_v34 = vpop.eup %226 }
 0x187   :  { %v96_v35 = vmul.f32 %v227_v34, %v94_v33  ;;  %vm102_vm4 = vweird.f32 %v227_v34  ;;  %v229_v53 = vpop.eup %228 }
 0x188   :  { %vm103_vm6 = vmor %vm101_vm5, %vm102_vm4  ;;  %v158_v54 = vmul.f32 32.0, %v229_v53  ;;  %vm162_vm8 = vweird.f32 %v229_v53 }
 0x189   :  { %v97_v36 = vmul.f32 %v227_v34, %v96_v35 }
 0x18a   :  { %v159_v55 = vsub.f32 1.0, %v158_v54 }
 0x18b   :  { %v98_v37 = vmul.f32 0.5, %v97_v36 }
 0x18c   :  { %v160_v56 = vmul.f32 %v229_v53, %v159_v55 }
 0x18d   :  { %v99_v38 = vsub.f32 1.5, %v98_v37 }
 0x18e   :  { %v161_v57 = vadd.f32 %v229_v53, %v160_v56 }
 0x18f   :  { %v100_v39 = vmul.f32 %v227_v34, %v99_v38 }
 0x190   :  { %v163_v58 = vsel %vm162_vm8, %v229_v53, %v161_v57 }
 0x191   :  { %v104_v41 = vsel %vm103_vm6, %v227_v34, %v100_v39 }
 0x192   :  { %v105_v42 = vmul.f32 %v104_v41, %v88_v20 }
 0x194   :  { %v110_v44 = vmul.f32 %v217_v40, %v105_v42 }
 0x196   :  { %v115_v45 = vadd.f32 %v218_v43, %v110_v44 }
 0x198   :  { %213 = vmatmul.msk.f32.vlgmr.msra.gmra.mxu1 %vm76_vm2, %v115_v45 }
 0x215   :  { %v148_v47 = vpop.f32.mrf.mxu1 }
 0x216   :  { %v149_v48 = vadd.f32 %v219_v46, %v148_v47 }
 0x218   :  { %v152_v49 = vmul.f32 0.01, %v149_v48  ;;  %vm151_vm7 = vcmp.ge.f32.partialorder %v149_v48, 0.0 }
 0x21a   :  { %v153_v50 = vsel %vm151_vm7, %v149_v48, %v152_v49 }
 0x21b   :  { %v154_v51 = vsel %vm49_vm0, %v153_v50, 0.0 }
 0x21c   :  { %155 = vadd.xlane.f32.xlu1 %v154_v51 }
 0x28f   :  { %v156_v59 = vpop.xlane.xlu1 %155 }
 0x290   :  { %v164_v60 = vmul.f32 %v163_v58, %v156_v59 }
 0x292   :  { %v165_v61 = vsub.f32 %v153_v50, %v164_v60 }
 0x294   :  { %v166_v62 = vmul.f32 %v165_v61, %v165_v61 }
 0x296   :  { %v167_v63 = vsel %vm49_vm0, %v166_v62, 0.0 }
 0x297   :  { %168 = vadd.xlane.f32.xlu1 %v167_v63 }
 0x30a   :  { %v169_v0 = vpop.xlane.xlu1 %168 }
 0x30b   :  { %v170_v2 = vmul.f32 %v169_v0, %v163_v58 }
 0x30d   :  { %v171_v3 = vadd.f32 1e-05, %v170_v2 }
 0x30f   :  { %230 = vrsqrt.f32 %v171_v3  ;;  %vm178_vm10 = vweird.f32 %v171_v3 }
 0x315   :  { %v231_v4 = vpop.eup %230 }
 0x316   :  { %v173_v5 = vmul.f32 %v231_v4, %v171_v3  ;;  %vm179_vm9 = vweird.f32 %v231_v4 }
 0x317   :  { %vm180_vm11 = vmor %vm178_vm10, %vm179_vm9 }
 0x318   :  { %v174_v6 = vmul.f32 %v231_v4, %v173_v5 }
 0x31a   :  { %v175_v7 = vmul.f32 0.5, %v174_v6 }
 0x31c   :  { %v176_v8 = vsub.f32 1.5, %v175_v7 }
 0x31e   :  { %v177_v9 = vmul.f32 %v231_v4, %v176_v8 }
 0x320   :  { %v181_v11 = vsel %vm180_vm11, %v231_v4, %v177_v9 }
 0x321   :  { %v182_v12 = vmul.f32 %v181_v11, %v165_v61 }
 0x323   :  { %v187_v14 = vmul.f32 %v220_v10, %v182_v12 }
 0x325   :  { %v192_v16 = vadd.f32 %v221_v13, %v187_v14 }
 0x327   :  { %v197_v17 = vmul.f32 %v222_v15, %v192_v16 }
 0x329   :  { %v198_v18 = vsel %vm49_vm0, %v197_v17, 0.0 }
 0x32a   :  { %199 = vadd.xlane.f32.xlu2 %v198_v18 }
 0x39d   :  { %v200_v20 = vpop.xlane.xlu2 %199 }
 0x39e   :  { %v205_v21 = vadd.f32 %v223_v19, %v200_v20 }
 0x3a0   :  { %207 = vst.msk [vmem:[%s378_s11] sm:$0xff] %vm206_vm12, %v205_v21 }

</bundles_post_ra>
